<compile_context>
chip_gen: v5e
topology: v5e:2x2
jax: 0.10.0
libtpu: 0.0.40
codegen_flags: <defaults>
</compile_context>

<pallas_src>
import functools

import jax
import jax.numpy as jnp
from jax import lax
from jax.experimental import pallas as pl
from jax.experimental.pallas import tpu as pltpu


def _label_smoothing_kernel(x_ref, t_ref, out_ref, *, confidence, smoothing):
    x = x_ref[...].astype(jnp.float32)                  # (tn, C)
    tn, C = x.shape

    # Row-wise log-sum-exp pieces; xm is computed once and reused everywhere.
    m = jnp.max(x, axis=-1, keepdims=True)              # (tn, 1)
    xm = x - m                                          # (tn, C)
    lse = jnp.log(jnp.sum(jnp.exp(xm), axis=-1, keepdims=True))  # (tn, 1)

    # loss = conf*(m + lse - x[t]) + s*(m + lse - mean(x))
    #      = lse - sum_c (conf*1[c==t] + s/C) * xm[c]          (m cancels)
    tgt = t_ref[...]                                    # (tn, 1) int32, this tile
    col = lax.broadcasted_iota(jnp.int32, (tn, C), 1)
    uni = smoothing / C
    w = jnp.where(col == tgt, confidence + uni, uni)    # one-hot + uniform weights
    weighted = jnp.sum(w * xm, axis=-1, keepdims=True)  # (tn, 1)

    out_ref[...] = lse - weighted


def _choose_tile_n(N, C, itemsize):
    """Largest row tile with an ~8 MiB x block, 32-row aligned, capped at 4096."""
    budget = 8 * 1024 * 1024
    rows = budget // max(C * itemsize, 1)
    rows = min(rows, 4096)                  # bounds (tile_n,1) lane-padding waste
    rows = max(32, (rows // 32) * 32)       # valid sublane packing f32/bf16/int8
    if N <= rows:
        return N                            # single full-extent block (always legal)
    return rows


def label_smoothing_loss(x, target, smoothing=0.1, tile_n=None):
    """x: (N, C) float logits; target: (N,) int class indices. Returns scalar."""
    N, C = x.shape
    confidence = 1.0 - smoothing
    itemsize = jnp.dtype(x.dtype).itemsize

    if tile_n is None:
        tile_n = _choose_tile_n(N, C, itemsize)
    num_tiles = pl.cdiv(N, tile_n)

    target2d = target.astype(jnp.int32).reshape(N, 1)

    kernel = functools.partial(
        _label_smoothing_kernel,
        confidence=confidence,
        smoothing=smoothing,
    )

    cost = pl.CostEstimate(
        flops=6 * N * C,                 # sub/cmp/select/mul/add per element
        transcendentals=N * C + N,       # exp per element + log per row
        bytes_accessed=N * C * itemsize + N * 4 + N * 4,
    )

    per_row = pl.pallas_call(
        kernel,
        out_shape=jax.ShapeDtypeStruct((N, 1), jnp.float32),
        grid_spec=pltpu.PrefetchScalarGridSpec(
            num_scalar_prefetch=0,
            grid=(num_tiles,),
            in_specs=[
                # Logits: one (tile_n, C) block per grid step (ragged last block
                # handled by Pallas; garbage rows are row-local and never written).
                pl.BlockSpec((tile_n, C), lambda i: (i, 0)),
                # Targets: per-tile block (bounded VMEM, no resident N-sized buffer).
                pl.BlockSpec((tile_n, 1), lambda i: (i, 0)),
            ],
            out_specs=pl.BlockSpec((tile_n, 1), lambda i: (i, 0)),
        ),
        compiler_params=pltpu.CompilerParams(
            dimension_semantics=("parallel",),
            vmem_limit_bytes=48 * 1024 * 1024,
        ),
        cost_estimate=cost,
    )(x, target2d)

    # Final (negligible) reduction in plain JAX; only real rows exist in per_row.
    return jnp.mean(per_row[:, 0])


def _reference(x, target, smoothing=0.1):
    confidence = 1.0 - smoothing
    logprobs = jax.nn.log_softmax(x.astype(jnp.float32), axis=-1)
    nll = -jnp.take_along_axis(logprobs, target[:, None].astype(jnp.int32),
                               axis=-1)[:, 0]
    smooth = -jnp.mean(logprobs, axis=-1)
    return jnp.mean(confidence * nll + smoothing * smooth)


if __name__ == "__main__":
    key = jax.random.PRNGKey(0)

    # Case 1: small, single full-extent block.
    kx, kt = jax.random.split(key)
    N, C = 16, 32
    x = jax.random.normal(kx, (N, C), dtype=jnp.float32)
    target = jax.random.randint(kt, (N,), 0, C, dtype=jnp.int32)
    loss = jax.block_until_ready(label_smoothing_loss(x, target, smoothing=0.1))
    ref = _reference(x, target, smoothing=0.1)
    assert jnp.allclose(loss, ref, atol=1e-5, rtol=1e-5), (loss, ref)

    # Case 2: ragged N with a single block (full-extent, not multiple of 8).
    kx2, kt2 = jax.random.split(kt)
    N2, C2 = 21, 40
    x2 = jax.random.normal(kx2, (N2, C2), dtype=jnp.float32)
    target2 = jax.random.randint(kt2, (N2,), 0, C2, dtype=jnp.int32)
    loss2 = jax.block_until_ready(label_smoothing_loss(x2, target2, smoothing=0.1))
    ref2 = _reference(x2, target2, smoothing=0.1)
    assert jnp.allclose(loss2, ref2, atol=1e-5, rtol=1e-5), (loss2, ref2)

    # Case 3: multi-tile grid with a ragged (partial) last block — exercises the
    # no-pad path where the trailing block rows are masked out of the output.
    kx3, kt3 = jax.random.split(kt2)
    N3, C3 = 100, 128
    x3 = jax.random.normal(kx3, (N3, C3), dtype=jnp.float32)
    target3 = jax.random.randint(kt3, (N3,), 0, C3, dtype=jnp.int32)
    loss3 = jax.block_until_ready(
        label_smoothing_loss(x3, target3, smoothing=0.1, tile_n=32))
    ref3 = _reference(x3, target3, smoothing=0.1)
    assert jnp.allclose(loss3, ref3, atol=1e-5, rtol=1e-5), (loss3, ref3)

    print("KERNEL_OK")
</pallas_src>

<mosaic_0001>
module attributes {stable_mosaic.version = 11 : i64} {
  func.func @_label_smoothing_kernel(%arg0: i32, %arg1: memref<16x32xf32, #tpu.memory_space<vmem>>, %arg2: memref<16x1xi32, #tpu.memory_space<vmem>>, %arg3: memref<16x1xf32, #tpu.memory_space<vmem>>) attributes {dimension_semantics = [#tpu.dimension_semantics<parallel>], iteration_bounds = array<i64: 1>, scalar_prefetch = 0 : i64, scratch_operands = 0 : i64, tpu.core_type = #tpu.core_type<tc>, window_params = [{transform_indices = @transform_0, window_bounds = array<i64: 16, 32>}, {transform_indices = @transform_1, window_bounds = array<i64: 16, 1>}, {transform_indices = @transform_2, window_bounds = array<i64: 16, 1>}]} {
    %c0 = arith.constant 0 : index
    %c0_0 = arith.constant 0 : index
    %0 = vector.load %arg1[%c0, %c0_0] : memref<16x32xf32, #tpu.memory_space<vmem>>, vector<16x32xf32>
    %cst = arith.constant dense<0xFF800000> : vector<16xf32>
    %1 = vector.multi_reduction <maximumf>, %0, %cst [1] : vector<16x32xf32> to vector<16xf32>
    %2 = vector.shape_cast %1 : vector<16xf32> to vector<16x1xf32>
    %3 = vector.broadcast %2 : vector<16x1xf32> to vector<16x32xf32>
    %4 = arith.subf %0, %3 : vector<16x32xf32>
    %5 = math.exp %4 : vector<16x32xf32>
    %cst_1 = arith.constant dense<0.000000e+00> : vector<16xf32>
    %6 = vector.multi_reduction <add>, %5, %cst_1 [1] : vector<16x32xf32> to vector<16xf32>
    %7 = vector.shape_cast %6 : vector<16xf32> to vector<16x1xf32>
    %8 = math.log %7 : vector<16x1xf32>
    %c0_2 = arith.constant 0 : index
    %c0_3 = arith.constant 0 : index
    %9 = vector.load %arg2[%c0_2, %c0_3] : memref<16x1xi32, #tpu.memory_space<vmem>>, vector<16x1xi32>
    %10 = tpu.iota {dimensions = array<i32: 1>} : vector<16x32xi32>
    %11 = vector.broadcast %9 : vector<16x1xi32> to vector<16x32xi32>
    %12 = arith.cmpi eq, %10, %11 : vector<16x32xi32>
    %cst_4 = arith.constant 0.903124988 : f32
    %cst_5 = arith.constant 3.125000e-03 : f32
    %13 = vector.broadcast %cst_4 : f32 to vector<16x32xf32>
    %14 = vector.broadcast %cst_5 : f32 to vector<16x32xf32>
    %15 = arith.select %12, %13, %14 : vector<16x32xi1>, vector<16x32xf32>
    %16 = arith.mulf %15, %4 : vector<16x32xf32>
    %cst_6 = arith.constant dense<0.000000e+00> : vector<16xf32>
    %17 = vector.multi_reduction <add>, %16, %cst_6 [1] : vector<16x32xf32> to vector<16xf32>
    %18 = vector.shape_cast %17 : vector<16xf32> to vector<16x1xf32>
    %19 = arith.subf %8, %18 : vector<16x1xf32>
    %c0_7 = arith.constant 0 : index
    %c0_8 = arith.constant 0 : index
    %20 = vector.load %arg3[%c0_7, %c0_8] : memref<16x1xf32, #tpu.memory_space<vmem>>, vector<16x1xf32>
    tpu.vector_store %arg3[%c0_7, %c0_8], %19 {strides = array<i32>} : memref<16x1xf32, #tpu.memory_space<vmem>>, vector<16x1xf32>,
    return
  }
  func.func @transform_0(%arg0: i32) -> (i32, i32) {
    %c0_i32 = arith.constant 0 : i32
    %c0_i32_0 = arith.constant 0 : i32
    return %arg0, %c0_i32 : i32, i32
  }
  func.func @transform_1(%arg0: i32) -> (i32, i32) {
    %c0_i32 = arith.constant 0 : i32
    %c0_i32_0 = arith.constant 0 : i32
    return %arg0, %c0_i32 : i32, i32
  }
  func.func @transform_2(%arg0: i32) -> (i32, i32) {
    %c0_i32 = arith.constant 0 : i32
    %c0_i32_0 = arith.constant 0 : i32
    return %arg0, %c0_i32 : i32, i32
  }
}

</mosaic_0001>

<bundles_post_ra>
// kernel: tpu_custom_call.1
= control target key start
LH: loop header
LB: loop body
LE: loop exit
PB: predicated region body
PF: predicated region fallthrough
CT: control target
= control target key end

     0   :  { %vm13_vm0 = vcmask 261120   ;;  %v79_v0 = vmov 0   ;;  %v38_v7 = vlaneseq  ;;  %v80_v10 = vmov 0.003125   ;;  %s120_s0 = inlined_call_operand.vmem [shape: f32[16,32], index: 0, kind: input, shape index: {}]   ;;  %s121_s1 = inlined_call_operand.vmem [shape: s32[16,1], index: 1, kind: input, shape index: {}]   ;;  %s122_s2 = inlined_call_operand.vmem [shape: f32[16,1], index: 2, kind: output, shape index: {}]  }
   0x1   :  { %69 = vset.pattern.permute.xlu1 %v79_v0  ;;  %v11_v1 = vld [vmem:[%s120_s0] sm:$0xff]  ;;  %70 = vset.pattern.permute.xlu0 %v79_v0  ;;  %v12_v4 = vld [vmem:[%s120_s0 + $0x8] sm:$0xff]  ;;  %vm60_vm3 = vcmask 7168  }
   0x2   :  { %v36_v2 = vld [vmem:[%s121_s1] sm:$0xff]  ;;  %v14_v3 = vsel %vm13_vm0, %v11_v1, -inf  ;;  %v37_v5 = vld [vmem:[%s121_s1 + $0x8] sm:$0xff]  ;;  %v17_v6 = vsel %vm13_vm0, %v12_v4, -inf  ;;  %v39_v8 = vand.u32 127, %v38_v7 }
   0x3   :  { %41 = vperm.xlu1 %69, %v36_v2   ;;  %15 = vmax.xlane.f32.xlu0 %v14_v3 }
   0xb   :  { %44 = vperm.xlu1 %69, %v37_v5   ;;  %18 = vmax.xlane.f32.xlu0 %v17_v6 }
  0x75   :  { %v42_v9 = vpop.permute.xlu1 %41 }
  0x76   :  { %vm46_vm1 = vcmp.eq.s32.totalorder %v39_v8, %v42_v9  ;;  %v16_v12 = vpop.xlane.xlu0 %15 }
  0x77   :  { %v48_v11 = vsel %vm46_vm1, 0.903125, %v80_v10  ;;  %v20_v13 = vsub.f32 %v11_v1, %v16_v12 }
  0x79   :  { %v22_v14 = vmul.f32 1.442695, %v20_v13  ;;  %v50_v15 = vmul.f32 %v48_v11, %v20_v13 }
  0x7b   :  { %71 = vpow2.f32 %v22_v14  ;;  %v52_v16 = vsel %vm13_vm0, %v50_v15, 0.0 }
  0x7c   :  { %53 = vadd.xlane.f32.xlu0 %v52_v16 }
  0x7d   :  { %v45_v17 = vpop.permute.xlu1 %44 }
  0x7e   :  { %vm47_vm2 = vcmp.eq.s32.totalorder %v39_v8, %v45_v17  ;;  %v19_v19 = vpop.xlane.xlu0 %18 }
  0x7f   :  { %v49_v18 = vsel %vm47_vm2, 0.903125, %v80_v10  ;;  %v21_v20 = vsub.f32 %v12_v4, %v19_v19 }
  0x81   :  { %v72_v21 = vpop.eup %71  ;;  %v24_v22 = vmul.f32 1.442695, %v21_v20  ;;  %v51_v23 = vmul.f32 %v49_v18, %v21_v20 }
  0x82   :  { %v26_v24 = vsel %vm13_vm0, %v72_v21, 0.0 }
  0x83   :  { %73 = vpow2.f32 %v24_v22  ;;  %27 = vadd.xlane.f32.xlu2 %v26_v24  ;;  %v55_v25 = vsel %vm13_vm0, %v51_v23, 0.0 }
  0x84   :  { %56 = vadd.xlane.f32.xlu1 %v55_v25 }
  0x89   :  { %v74_v26 = vpop.eup %73 }
  0x8a   :  { %v29_v27 = vsel %vm13_vm0, %v74_v26, 0.0 }
  0x8b   :  { %30 = vadd.xlane.f32.xlu2 %v29_v27 }
  0xef   :  { %v54_v32 = vpop.xlane.xlu0 %53 }
  0xf6   :  { %v28_v28 = vpop.xlane.xlu2 %27 }
  0xf7   :  { %75 = vlog2.f32 %v28_v28  ;;  %v57_v36 = vpop.xlane.xlu1 %56 }
  0xfd   :  { %v76_v29 = vpop.eup %75 }
  0xfe   :  { %v33_v30 = vmul.f32 0.6931472, %v76_v29  ;;  %v31_v31 = vpop.xlane.xlu2 %30 }
  0xff   :  { %77 = vlog2.f32 %v31_v31 }
 0x100   :  { %v58_v33 = vsub.f32 %v33_v30, %v54_v32 }
 0x102   :  { %61 = vst.msk [vmem:[%s122_s2] sm:$0xff] %vm60_vm3, %v58_v33 }
 0x105   :  { %v78_v34 = vpop.eup %77 }
 0x106   :  { %v35_v35 = vmul.f32 0.6931472, %v78_v34 }
 0x108   :  { %v59_v37 = vsub.f32 %v35_v35, %v57_v36 }
 0x10a   :  { %62 = vst.msk [vmem:[%s122_s2 + $0x8] sm:$0xff] %vm60_vm3, %v59_v37 }

</bundles_post_ra>
